<compile_context>
chip_gen: v6e
topology: v6e:2x2x1
jax: 0.10.0
libtpu: 0.0.40
codegen_flags: <defaults>
</compile_context>

<pallas_src>
import jax
import jax.numpy as jnp
from jax.experimental import pallas as pl
from jax.experimental.pallas import tpu as pltpu

_LANE = 128

# Packed parameter layout (flat f32[32] in SMEM), with sigmoid affines folded:
#   w1' (4,3): idx 3*j+k      ->  0..11     (= 0.5 * w1)
#   b1' (4,) : idx 12+j       -> 12..15     (= 0.5 * b1)
#   w2' (2,4): idx 16+4*j+k   -> 16..23     (= 0.25 * w2)
#   b2' (2,) : idx 24+j       -> 24..25     (= 0.25*sum(w2,-1) + 0.5*b2)
#   w3' (1,2): idx 26+k       -> 26..27     (= 0.25 * w3)
#   b3'      : idx 28                       (= 0.25*sum(w3,-1) + 0.5*b3)
#   padding  : idx 29..31
#
# Derivation: sigmoid(z) = 0.5*tanh(0.5*z) + 0.5.  The 0.5*z input scale is
# folded into each layer's weights/bias; the 0.5*t+0.5 output affine of
# layers 1 and 2 is absorbed into the next layer's weights/bias.  Only the
# final layer keeps its 0.5*t+0.5 output affine (2 VPU ops).


def paxos_kernel(x_ref, p_ref, o_ref):
    # x_ref: VMEM (3, RT, 128) f32 -- batch on (sublane, lane), features outer
    # p_ref: SMEM (32,)       f32 -- packed/folded weights & biases
    # o_ref: VMEM (RT, 128)   f32
    x0 = x_ref[0]          # (RT, 128)
    x1 = x_ref[1]
    x2 = x_ref[2]

    # Layer 1 (3 -> 4): t1_j = tanh(w1'[j] . x + b1'[j])
    t1 = []
    for j in range(4):
        z = (p_ref[3 * j + 0] * x0
             + p_ref[3 * j + 1] * x1
             + p_ref[3 * j + 2] * x2
             + p_ref[12 + j])
        t1.append(jnp.tanh(z))

    # Layer 2 (4 -> 2): t2_j = tanh(w2'[j] . t1 + b2'[j])
    t2 = []
    for j in range(2):
        z = (p_ref[16 + 4 * j + 0] * t1[0]
             + p_ref[16 + 4 * j + 1] * t1[1]
             + p_ref[16 + 4 * j + 2] * t1[2]
             + p_ref[16 + 4 * j + 3] * t1[3]
             + p_ref[24 + j])
        t2.append(jnp.tanh(z))

    # Layer 3 (2 -> 1) + final sigmoid output affine.
    t3 = jnp.tanh(p_ref[26] * t2[0] + p_ref[27] * t2[1] + p_ref[28])
    o_ref[...] = (0.5 * t3 + 0.5).astype(o_ref.dtype)


def _pack_params(params):
    """Pack weights/biases with the sigmoid affines folded in (see layout)."""
    w1 = params["w1"].astype(jnp.float32)
    b1 = params["b1"].astype(jnp.float32)
    w2 = params["w2"].astype(jnp.float32)
    b2 = params["b2"].astype(jnp.float32)
    w3 = params["w3"].astype(jnp.float32)
    b3 = params["b3"].astype(jnp.float32)

    w1p = 0.5 * w1
    b1p = 0.5 * b1
    # h1 = 0.5*t1 + 0.5  =>  w2 @ h1 + b2 = (0.5*w2) @ t1 + (0.5*sum(w2,-1)+b2)
    w2p = 0.25 * w2
    b2p = 0.25 * jnp.sum(w2, axis=1) + 0.5 * b2
    w3p = 0.25 * w3
    b3p = 0.25 * jnp.sum(w3, axis=1) + 0.5 * b3

    return jnp.concatenate([
        w1p.reshape(-1), b1p.reshape(-1),
        w2p.reshape(-1), b2p.reshape(-1),
        w3p.reshape(-1), b3p.reshape(-1),
        jnp.zeros((3,), jnp.float32),          # pad 29 -> 32
    ]).astype(jnp.float32)


def paxos_forward(x, params, r_tile=2048, vmem_limit_bytes=48 * 1024 * 1024):
    """x: [B, 3] float32. params: PyTorch-layout (out,in) weights / (out,) biases.

    Returns [B, 1] float32, matching PaxosModel.forward.

    r_tile is the number of 128-wide batch rows per grid step (>= 8 and a
    multiple of 8 when tiling); default 2048 -> 3 MiB input + 1 MiB output
    per step (8 MiB double-buffered), safe for v5e/v6e/v7x VMEM.
    """
    B = x.shape[0]
    b_pad = pl.cdiv(B, _LANE) * _LANE
    R = b_pad // _LANE

    # Feature-major with batch on (sublane, lane): (3, R, 128).
    # Transpose + tail-pad fuse into one XLA pass under jit; reshape is free.
    x_t = x.astype(jnp.float32).T                      # (3, B)
    if b_pad != B:
        x_t = jnp.pad(x_t, ((0, 0), (0, b_pad - B)))
    x3 = x_t.reshape(3, R, _LANE)

    if R <= r_tile:
        rt, n_tiles = R, 1                             # single full-dim tile
    else:
        rt = max(8, (r_tile // 8) * 8)                 # sublane-aligned tile
        n_tiles = pl.cdiv(R, rt)                       # ragged last block OK

    packed = _pack_params(params)

    out = pl.pallas_call(
        paxos_kernel,
        out_shape=jax.ShapeDtypeStruct((R, _LANE), jnp.float32),
        grid=(n_tiles,),
        in_specs=[
            pl.BlockSpec((3, rt, _LANE), lambda i: (0, i, 0)),      # x tile
            pl.BlockSpec(memory_space=pltpu.MemorySpace.SMEM),      # params
        ],
        out_specs=pl.BlockSpec((rt, _LANE), lambda i: (i, 0)),
        compiler_params=pltpu.CompilerParams(
            dimension_semantics=("parallel",),
            vmem_limit_bytes=vmem_limit_bytes),
    )(x3, packed)

    # Contiguous reshape + tail slice back to the PyTorch (B, 1) layout.
    return out.reshape(b_pad)[:B].reshape(B, 1)


def init_params(key):
    """Deterministic init matching the PyTorch Linear shapes (out, in)."""
    k1, k2, k3, k4, k5, k6 = jax.random.split(key, 6)
    return {
        "w1": jax.random.normal(k1, (4, 3), jnp.float32) * 0.5,
        "b1": jax.random.normal(k2, (4,), jnp.float32) * 0.1,
        "w2": jax.random.normal(k3, (2, 4), jnp.float32) * 0.5,
        "b2": jax.random.normal(k4, (2,), jnp.float32) * 0.1,
        "w3": jax.random.normal(k5, (1, 2), jnp.float32) * 0.5,
        "b3": jax.random.normal(k6, (1,), jnp.float32) * 0.1,
    }


def paxos_reference(x, params):
    """Pure-JAX reference replicating the PyTorch forward exactly."""
    h = jax.nn.sigmoid(x @ params["w1"].T + params["b1"])
    h = jax.nn.sigmoid(h @ params["w2"].T + params["b2"])
    h = jax.nn.sigmoid(h @ params["w3"].T + params["b3"])
    return h


if __name__ == "__main__":
    key = jax.random.PRNGKey(0)
    pkey, xkey1, xkey2, xkey3 = jax.random.split(key, 4)
    params = init_params(pkey)

    # Small batch (single tile, R=1).
    B1 = 8
    x1 = jax.random.normal(xkey1, (B1, 3), jnp.float32)
    out1 = jax.block_until_ready(paxos_forward(x1, params))
    ref1 = jax.block_until_ready(paxos_reference(x1, params))
    assert out1.shape == (B1, 1), out1.shape
    assert jnp.allclose(out1, ref1, atol=1e-5, rtol=1e-5)

    # Non-multiple-of-128 batch (single tile with tail-lane padding).
    B2 = 300
    x2 = jax.random.normal(xkey2, (B2, 3), jnp.float32)
    out2 = jax.block_until_ready(paxos_forward(x2, params))
    ref2 = jax.block_until_ready(paxos_reference(x2, params))
    assert out2.shape == (B2, 1), out2.shape
    assert jnp.allclose(out2, ref2, atol=1e-5, rtol=1e-5)

    # Multi-tile grid with a ragged last block (exercises tiling path).
    B3 = 2200                      # R=18, r_tile=8 -> 3 grid steps, ragged tail
    x3 = jax.random.normal(xkey3, (B3, 3), jnp.float32)
    out3 = jax.block_until_ready(paxos_forward(x3, params, r_tile=8))
    ref3 = jax.block_until_ready(paxos_reference(x3, params))
    assert out3.shape == (B3, 1), out3.shape
    assert jnp.allclose(out3, ref3, atol=1e-5, rtol=1e-5)

    print("KERNEL_OK")
</pallas_src>

<mosaic_0001>
module attributes {stable_mosaic.version = 11 : i64} {
  func.func @paxos_kernel(%arg0: i32, %arg1: memref<3x1x128xf32, #tpu.memory_space<vmem>>, %arg2: memref<32xf32, #tpu.memory_space<smem>>, %arg3: memref<1x128xf32, #tpu.memory_space<vmem>>) attributes {dimension_semantics = [#tpu.dimension_semantics<parallel>], iteration_bounds = array<i64: 1>, scalar_prefetch = 0 : i64, scratch_operands = 0 : i64, tpu.core_type = #tpu.core_type<tc>, window_params = [{transform_indices = @transform_0, window_bounds = array<i64: 3, 1, 128>}, {transform_indices = @transform_1, window_bounds = array<i64: 32>}, {transform_indices = @transform_2, window_bounds = array<i64: 1, 128>}]} {
    %c0 = arith.constant 0 : index
    %c0_0 = arith.constant 0 : index
    %c0_1 = arith.constant 0 : index
    %0 = vector.load %arg1[%c0, %c0_0, %c0_1] : memref<3x1x128xf32, #tpu.memory_space<vmem>>, vector<1x1x128xf32>
    %1 = vector.shape_cast %0 : vector<1x1x128xf32> to vector<1x128xf32>
    %c1 = arith.constant 1 : index
    %c0_2 = arith.constant 0 : index
    %c0_3 = arith.constant 0 : index
    %2 = vector.load %arg1[%c1, %c0_2, %c0_3] : memref<3x1x128xf32, #tpu.memory_space<vmem>>, vector<1x1x128xf32>
    %3 = vector.shape_cast %2 : vector<1x1x128xf32> to vector<1x128xf32>
    %c2 = arith.constant 2 : index
    %c0_4 = arith.constant 0 : index
    %c0_5 = arith.constant 0 : index
    %4 = vector.load %arg1[%c2, %c0_4, %c0_5] : memref<3x1x128xf32, #tpu.memory_space<vmem>>, vector<1x1x128xf32>
    %5 = vector.shape_cast %4 : vector<1x1x128xf32> to vector<1x128xf32>
    %c0_6 = arith.constant 0 : index
    %6 = memref.load %arg2[%c0_6] : memref<32xf32, #tpu.memory_space<smem>>
    %7 = vector.broadcast %6 : f32 to vector<1x128xf32>
    %8 = arith.mulf %7, %1 : vector<1x128xf32>
    %c1_7 = arith.constant 1 : index
    %9 = memref.load %arg2[%c1_7] : memref<32xf32, #tpu.memory_space<smem>>
    %10 = vector.broadcast %9 : f32 to vector<1x128xf32>
    %11 = arith.mulf %10, %3 : vector<1x128xf32>
    %12 = arith.addf %8, %11 : vector<1x128xf32>
    %c2_8 = arith.constant 2 : index
    %13 = memref.load %arg2[%c2_8] : memref<32xf32, #tpu.memory_space<smem>>
    %14 = vector.broadcast %13 : f32 to vector<1x128xf32>
    %15 = arith.mulf %14, %5 : vector<1x128xf32>
    %16 = arith.addf %12, %15 : vector<1x128xf32>
    %c12 = arith.constant 12 : index
    %17 = memref.load %arg2[%c12] : memref<32xf32, #tpu.memory_space<smem>>
    %18 = vector.broadcast %17 : f32 to vector<1x128xf32>
    %19 = arith.addf %16, %18 : vector<1x128xf32>
    %20 = math.tanh %19 : vector<1x128xf32>
    %c3 = arith.constant 3 : index
    %21 = memref.load %arg2[%c3] : memref<32xf32, #tpu.memory_space<smem>>
    %22 = vector.broadcast %21 : f32 to vector<1x128xf32>
    %23 = arith.mulf %22, %1 : vector<1x128xf32>
    %c4 = arith.constant 4 : index
    %24 = memref.load %arg2[%c4] : memref<32xf32, #tpu.memory_space<smem>>
    %25 = vector.broadcast %24 : f32 to vector<1x128xf32>
    %26 = arith.mulf %25, %3 : vector<1x128xf32>
    %27 = arith.addf %23, %26 : vector<1x128xf32>
    %c5 = arith.constant 5 : index
    %28 = memref.load %arg2[%c5] : memref<32xf32, #tpu.memory_space<smem>>
    %29 = vector.broadcast %28 : f32 to vector<1x128xf32>
    %30 = arith.mulf %29, %5 : vector<1x128xf32>
    %31 = arith.addf %27, %30 : vector<1x128xf32>
    %c13 = arith.constant 13 : index
    %32 = memref.load %arg2[%c13] : memref<32xf32, #tpu.memory_space<smem>>
    %33 = vector.broadcast %32 : f32 to vector<1x128xf32>
    %34 = arith.addf %31, %33 : vector<1x128xf32>
    %35 = math.tanh %34 : vector<1x128xf32>
    %c6 = arith.constant 6 : index
    %36 = memref.load %arg2[%c6] : memref<32xf32, #tpu.memory_space<smem>>
    %37 = vector.broadcast %36 : f32 to vector<1x128xf32>
    %38 = arith.mulf %37, %1 : vector<1x128xf32>
    %c7 = arith.constant 7 : index
    %39 = memref.load %arg2[%c7] : memref<32xf32, #tpu.memory_space<smem>>
    %40 = vector.broadcast %39 : f32 to vector<1x128xf32>
    %41 = arith.mulf %40, %3 : vector<1x128xf32>
    %42 = arith.addf %38, %41 : vector<1x128xf32>
    %c8 = arith.constant 8 : index
    %43 = memref.load %arg2[%c8] : memref<32xf32, #tpu.memory_space<smem>>
    %44 = vector.broadcast %43 : f32 to vector<1x128xf32>
    %45 = arith.mulf %44, %5 : vector<1x128xf32>
    %46 = arith.addf %42, %45 : vector<1x128xf32>
    %c14 = arith.constant 14 : index
    %47 = memref.load %arg2[%c14] : memref<32xf32, #tpu.memory_space<smem>>
    %48 = vector.broadcast %47 : f32 to vector<1x128xf32>
    %49 = arith.addf %46, %48 : vector<1x128xf32>
    %50 = math.tanh %49 : vector<1x128xf32>
    %c9 = arith.constant 9 : index
    %51 = memref.load %arg2[%c9] : memref<32xf32, #tpu.memory_space<smem>>
    %52 = vector.broadcast %51 : f32 to vector<1x128xf32>
    %53 = arith.mulf %52, %1 : vector<1x128xf32>
    %c10 = arith.constant 10 : index
    %54 = memref.load %arg2[%c10] : memref<32xf32, #tpu.memory_space<smem>>
    %55 = vector.broadcast %54 : f32 to vector<1x128xf32>
    %56 = arith.mulf %55, %3 : vector<1x128xf32>
    %57 = arith.addf %53, %56 : vector<1x128xf32>
    %c11 = arith.constant 11 : index
    %58 = memref.load %arg2[%c11] : memref<32xf32, #tpu.memory_space<smem>>
    %59 = vector.broadcast %58 : f32 to vector<1x128xf32>
    %60 = arith.mulf %59, %5 : vector<1x128xf32>
    %61 = arith.addf %57, %60 : vector<1x128xf32>
    %c15 = arith.constant 15 : index
    %62 = memref.load %arg2[%c15] : memref<32xf32, #tpu.memory_space<smem>>
    %63 = vector.broadcast %62 : f32 to vector<1x128xf32>
    %64 = arith.addf %61, %63 : vector<1x128xf32>
    %65 = math.tanh %64 : vector<1x128xf32>
    %c16 = arith.constant 16 : index
    %66 = memref.load %arg2[%c16] : memref<32xf32, #tpu.memory_space<smem>>
    %67 = vector.broadcast %66 : f32 to vector<1x128xf32>
    %68 = arith.mulf %67, %20 : vector<1x128xf32>
    %c17 = arith.constant 17 : index
    %69 = memref.load %arg2[%c17] : memref<32xf32, #tpu.memory_space<smem>>
    %70 = vector.broadcast %69 : f32 to vector<1x128xf32>
    %71 = arith.mulf %70, %35 : vector<1x128xf32>
    %72 = arith.addf %68, %71 : vector<1x128xf32>
    %c18 = arith.constant 18 : index
    %73 = memref.load %arg2[%c18] : memref<32xf32, #tpu.memory_space<smem>>
    %74 = vector.broadcast %73 : f32 to vector<1x128xf32>
    %75 = arith.mulf %74, %50 : vector<1x128xf32>
    %76 = arith.addf %72, %75 : vector<1x128xf32>
    %c19 = arith.constant 19 : index
    %77 = memref.load %arg2[%c19] : memref<32xf32, #tpu.memory_space<smem>>
    %78 = vector.broadcast %77 : f32 to vector<1x128xf32>
    %79 = arith.mulf %78, %65 : vector<1x128xf32>
    %80 = arith.addf %76, %79 : vector<1x128xf32>
    %c24 = arith.constant 24 : index
    %81 = memref.load %arg2[%c24] : memref<32xf32, #tpu.memory_space<smem>>
    %82 = vector.broadcast %81 : f32 to vector<1x128xf32>
    %83 = arith.addf %80, %82 : vector<1x128xf32>
    %84 = math.tanh %83 : vector<1x128xf32>
    %c20 = arith.constant 20 : index
    %85 = memref.load %arg2[%c20] : memref<32xf32, #tpu.memory_space<smem>>
    %86 = vector.broadcast %85 : f32 to vector<1x128xf32>
    %87 = arith.mulf %86, %20 : vector<1x128xf32>
    %c21 = arith.constant 21 : index
    %88 = memref.load %arg2[%c21] : memref<32xf32, #tpu.memory_space<smem>>
    %89 = vector.broadcast %88 : f32 to vector<1x128xf32>
    %90 = arith.mulf %89, %35 : vector<1x128xf32>
    %91 = arith.addf %87, %90 : vector<1x128xf32>
    %c22 = arith.constant 22 : index
    %92 = memref.load %arg2[%c22] : memref<32xf32, #tpu.memory_space<smem>>
    %93 = vector.broadcast %92 : f32 to vector<1x128xf32>
    %94 = arith.mulf %93, %50 : vector<1x128xf32>
    %95 = arith.addf %91, %94 : vector<1x128xf32>
    %c23 = arith.constant 23 : index
    %96 = memref.load %arg2[%c23] : memref<32xf32, #tpu.memory_space<smem>>
    %97 = vector.broadcast %96 : f32 to vector<1x128xf32>
    %98 = arith.mulf %97, %65 : vector<1x128xf32>
    %99 = arith.addf %95, %98 : vector<1x128xf32>
    %c25 = arith.constant 25 : index
    %100 = memref.load %arg2[%c25] : memref<32xf32, #tpu.memory_space<smem>>
    %101 = vector.broadcast %100 : f32 to vector<1x128xf32>
    %102 = arith.addf %99, %101 : vector<1x128xf32>
    %103 = math.tanh %102 : vector<1x128xf32>
    %c26 = arith.constant 26 : index
    %104 = memref.load %arg2[%c26] : memref<32xf32, #tpu.memory_space<smem>>
    %105 = vector.broadcast %104 : f32 to vector<1x128xf32>
    %106 = arith.mulf %105, %84 : vector<1x128xf32>
    %c27 = arith.constant 27 : index
    %107 = memref.load %arg2[%c27] : memref<32xf32, #tpu.memory_space<smem>>
    %108 = vector.broadcast %107 : f32 to vector<1x128xf32>
    %109 = arith.mulf %108, %103 : vector<1x128xf32>
    %110 = arith.addf %106, %109 : vector<1x128xf32>
    %c28 = arith.constant 28 : index
    %111 = memref.load %arg2[%c28] : memref<32xf32, #tpu.memory_space<smem>>
    %112 = vector.broadcast %111 : f32 to vector<1x128xf32>
    %113 = arith.addf %110, %112 : vector<1x128xf32>
    %114 = math.tanh %113 : vector<1x128xf32>
    %cst = arith.constant 5.000000e-01 : f32
    %115 = vector.broadcast %cst : f32 to vector<1x128xf32>
    %116 = arith.mulf %115, %114 : vector<1x128xf32>
    %cst_9 = arith.constant 5.000000e-01 : f32
    %117 = vector.broadcast %cst_9 : f32 to vector<1x128xf32>
    %118 = arith.addf %116, %117 : vector<1x128xf32>
    %c0_10 = arith.constant 0 : index
    %c0_11 = arith.constant 0 : index
    %119 = vector.load %arg3[%c0_10, %c0_11] : memref<1x128xf32, #tpu.memory_space<vmem>>, vector<1x128xf32>
    tpu.vector_store %arg3[%c0_10, %c0_11], %118 {strides = array<i32>} : memref<1x128xf32, #tpu.memory_space<vmem>>, vector<1x128xf32>,
    return
  }
  func.func @transform_0(%arg0: i32) -> (i32, i32, i32) {
    %c0_i32 = arith.constant 0 : i32
    %c0_i32_0 = arith.constant 0 : i32
    %c0_i32_1 = arith.constant 0 : i32
    return %c0_i32, %arg0, %c0_i32_0 : i32, i32, i32
  }
  func.func @transform_1(%arg0: i32) -> i32 {
    %c0_i32 = arith.constant 0 : i32
    %c0_i32_0 = arith.constant 0 : i32
    return %c0_i32 : i32
  }
  func.func @transform_2(%arg0: i32) -> (i32, i32) {
    %c0_i32 = arith.constant 0 : i32
    %c0_i32_0 = arith.constant 0 : i32
    return %arg0, %c0_i32 : i32, i32
  }
}

</mosaic_0001>

<bundles_post_ra>
// kernel: tpu_custom_call.1
= control target key start
LH: loop header
LB: loop body
LE: loop exit
PB: predicated region body
PF: predicated region fallthrough
CT: control target
= control target key end

     0   :  { %7 = vsyncpa [#allocation3], 0  ;;  %s312_s0 = inlined_call_operand.hbm [shape: f32[3,1,128], index: 0, kind: input, shape index: {}]   ;;  %s313_s1 = inlined_call_operand.vmem [shape: f32[32], index: 1, kind: input, shape index: {}]   ;;  %s314_s2 = inlined_call_operand.hbm [shape: f32[1,128], index: 2, kind: output, shape index: {}]  }
   0x1   :  { %8 = vsyncpa [#allocation5], 0 }
   0x2   :  { %9 = vsyncpa [#allocation4], 0  ;;  %s277_s9 = smov [#allocation2]   ;;  %s28_s13 = sshll.u32 %s313_s1, 4  ;;  %s29_s13 = int_to_ptr.vmem [resolvable:$true] %s28_s13 }
   0x3   :  { %s15_s10 = sshll.u32 %s277_s9, 4  ;;  %s16_s10 = int_to_ptr.vmem [resolvable:$true] %s15_s10 }
   0x4   :  { %s227_s14 = scalar_lea.vmem %s16_s10, 48  ;;  %s231_s15 = scalar_lea.vmem %s16_s10, 64 }
   0x5   :  { %p228_p0 = scmp.ne.s32.totalorder %s16_s10, %s227_s14  ;;  %p232_p1 = scmp.lt.s32.totalorder %s16_s10, %s16_s10 }
   0x6   :  { %p233_p2 = scmp.lt.s32.totalorder %s231_s15, %s227_s14 }
   0x8   :  { %p234_p3 = por %p233_p2, %p232_p1 }
   0xa   :  { %p235_p4 = pnand %p234_p3, %p228_p0 }
   0xc   :  { %238 = shalt.err (!%p235_p4)
}
   0xd   :  { %s278_s16 = smov 16   ;;  %s279_s17 = smov 1  }
   0xe   :  { %21 = dma.hbm_to_vmem [thread:$0]  %s312_s0, 48, %s16_s10, [#allocation3], %s278_s16, %s278_s16, %s279_s17  }
   0xf   :  { %s239_s20 = scalar_lea.vmem %s29_s13, 16  ;;  %p244_p6 = scmp.lt.s32.totalorder %s29_s13, %s29_s13 }
  0x10   :  { %p240_p5 = scmp.ne.s32.totalorder %s29_s13, %s239_s20  ;;  %p245_p7 = scmp.lt.s32.totalorder %s239_s20, %s239_s20 }
  0x12   :  { %p246_p8 = por %p245_p7, %p244_p6 }
  0x14   :  { %p247_p9 = pnand %p246_p8, %p240_p5 }
  0x16   :  { %250 = shalt.err (!%p247_p9)
}
  0x17   :  { %s280_s1 = smov [#allocation6]  }
  0x18   :  { %31 = dma.vmem_to_smem %s29_s13, 16, %s280_s1, [#allocation5]  }
  0x19   :  { %271 = dma.done.wait [#allocation3], 48  }
  0x1a   :  { %272 = vsyncadd [#allocation3], 4294967248 }
  0x1b   :  { %273 = dma.done.wait [#allocation5], 16  }
  0x1c   :  { %274 = vsyncadd [#allocation5], 4294967280 }
  0x1d   :  { %38 = sfence }
  0x1e   :  { %s44_s21 = sld [smem:[#allocation6]]  ;;  %v39_v0 = vld [vmem:[#allocation2] sm:$0x1]  ;;  %v41_v1 = vld [vmem:[#allocation2 + $0x1] sm:$0x1]  ;;  %s281_s1 = smov [#allocation7]  }
  0x1f   :  { %s172_s22 = sld [smem:[#allocation6 + $0x1]]  ;;  %v43_v2 = vld [vmem:[#allocation2 + $0x2] sm:$0x1] }
  0x20   :  { %s173_s23 = sld [smem:[#allocation6 + $0x2]] }
  0x21   :  { %s174_s24 = sld [smem:[#allocation6 + $0xc]] }
  0x22   :  { %s175_s0 = sld [smem:[#allocation6 + $0x3]] }
  0x23   :  { %s176_s25 = sld [smem:[#allocation6 + $0x4]] }
  0x24   :  { %v45_v3 = vstv %s44_s21  ;;  %s177_s26 = sld [smem:[#allocation6 + $0x5]]  ;;  %s162_s21 = sshll.u32 %s281_s1, 4  ;;  %s163_s21 = int_to_ptr.vmem [resolvable:$true] %s162_s21 }
  0x25   :  { %v46_v4 = vmul.f32 %v45_v3, %v39_v0  ;;  %v48_v5 = vstv %s172_s22  ;;  %s303_s27 = sld [smem:[#allocation6 + $0xd]]  ;;  %s251_s22 = scalar_lea.vmem %s163_s21, 16 }
  0x26   :  { %v49_v6 = vmul.f32 %v48_v5, %v41_v1  ;;  %v52_v7 = vstv %s173_s23  ;;  %s179_s28 = sld [smem:[#allocation6 + $0x6]]  ;;  %p252_p10 = scmp.ne.s32.totalorder %s163_s21, %s251_s22 }
  0x27   :  { %v53_v8 = vmul.f32 %v52_v7, %v43_v2  ;;  %s180_s29 = sld [smem:[#allocation6 + $0x7]]  ;;  %v56_v11 = vstv %s174_s24  ;;  %s255_s23 = scalar_lea.vmem %s163_s21, 32 }
  0x28   :  { %v50_v9 = vadd.f32 %v49_v6, %v46_v4  ;;  %v60_v10 = vstv %s175_s0  ;;  %s181_s30 = sld [smem:[#allocation6 + $0x8]]  ;;  %p256_p11 = scmp.lt.s32.totalorder %s163_s21, %s163_s21 }
  0x29   :  { %v61_v12 = vmul.f32 %v60_v10, %v39_v0  ;;  %v63_v13 = vstv %s176_s25  ;;  %s305_s3 = sld [smem:[#allocation6 + $0xe]]  ;;  %p257_p12 = scmp.lt.s32.totalorder %s255_s23, %s251_s22 }
  0x2a   :  { %v54_v14 = vadd.f32 %v53_v8, %v50_v9  ;;  %v64_v15 = vmul.f32 %v63_v13, %v41_v1  ;;  %v67_v16 = vstv %s177_s26  ;;  %s183_s4 = sld [smem:[#allocation6 + $0x9]] }
  0x2b   :  { %v68_v17 = vmul.f32 %v67_v16, %v43_v2  ;;  %s184_s5 = sld [smem:[#allocation6 + $0xa]]  ;;  %v71_v21 = vstv %s303_s27  ;;  %p258_p13 = por %p257_p12, %p256_p11 }
  0x2c   :  { %v57_v18 = vadd.f32 %v56_v11, %v54_v14  ;;  %v65_v19 = vadd.f32 %v64_v15, %v61_v12  ;;  %v75_v20 = vstv %s179_s28  ;;  %s185_s6 = sld [smem:[#allocation6 + $0xb]] }
  0x2d   :  { %v76_v22 = vmul.f32 %v75_v20, %v39_v0  ;;  %v78_v23 = vstv %s180_s29  ;;  %s186_s7 = sld [smem:[#allocation6 + $0xf]]  ;;  %p259_p0 = pnand %p258_p13, %p252_p10 }
  0x2e   :  { %205 = vtanh.f32 %v57_v18  ;;  %v69_v24 = vadd.f32 %v68_v17, %v65_v19  ;;  %v79_v25 = vmul.f32 %v78_v23, %v41_v1  ;;  %v82_v26 = vstv %s181_s30  ;;  %s187_s8 = sld [smem:[#allocation6 + $0x10]] }
  0x2f   :  { %v83_v27 = vmul.f32 %v82_v26, %v43_v2  ;;  %v86_v31 = vstv %s305_s3  ;;  %s192_s9 = sld [smem:[#allocation6 + $0x14]] }
  0x30   :  { %v72_v28 = vadd.f32 %v71_v21, %v69_v24  ;;  %v80_v29 = vadd.f32 %v79_v25, %v76_v22  ;;  %v90_v30 = vstv %s183_s4  ;;  %s188_s10 = sld [smem:[#allocation6 + $0x11]] }
  0x31   :  { %v91_v32 = vmul.f32 %v90_v30, %v39_v0  ;;  %v93_v33 = vstv %s184_s5  ;;  %s193_s11 = sld [smem:[#allocation6 + $0x15]] }
  0x32   :  { %207 = vtanh.f32 %v72_v28  ;;  %v84_v34 = vadd.f32 %v83_v27, %v80_v29  ;;  %v94_v35 = vmul.f32 %v93_v33, %v41_v1  ;;  %v97_v36 = vstv %s185_s6  ;;  %s189_s12 = sld [smem:[#allocation6 + $0x12]] }
  0x33   :  { %v98_v37 = vmul.f32 %v97_v36, %v43_v2  ;;  %v101_v40 = vstv %s186_s7  ;;  %s194_s13 = sld [smem:[#allocation6 + $0x16]] }
  0x34   :  { %v87_v38 = vadd.f32 %v86_v31, %v84_v34  ;;  %v95_v39 = vadd.f32 %v94_v35, %v91_v32  ;;  %v105_v44 = vstv %s187_s8  ;;  %s190_s14 = sld [smem:[#allocation6 + $0x13]] }
  0x35   :  { %v124_v45 = vstv %s192_s9  ;;  %s195_s15 = sld [smem:[#allocation6 + $0x17]] }
  0x36   :  { %209 = vtanh.f32 %v87_v38  ;;  %v99_v41 = vadd.f32 %v98_v37, %v95_v39  ;;  %v108_v46 = vstv %s188_s10  ;;  %s191_s16 = sld [smem:[#allocation6 + $0x18]] }
  0x37   :  { %v127_v47 = vstv %s193_s11  ;;  %s196_s17 = sld [smem:[#allocation6 + $0x19]] }
  0x38   :  { %v102_v42 = vadd.f32 %v101_v40, %v99_v41  ;;  %v112_v53 = vstv %s189_s12  ;;  %s197_s18 = sld [smem:[#allocation6 + $0x1a]] }
  0x39   :  { %v131_v54 = vstv %s194_s13  ;;  %s198_s19 = sld [smem:[#allocation6 + $0x1b]] }
  0x3a   :  { %211 = vtanh.f32 %v102_v42  ;;  %v116_v60 = vstv %s190_s14  ;;  %s199_s20 = sld [smem:[#allocation6 + $0x1c]] }
  0x3b   :  { %v206_v43 = vpop.eup %205  ;;  %v135_v61 = vstv %s195_s15 }
  0x3c   :  { %v106_v48 = vmul.f32 %v206_v43, %v105_v44  ;;  %v125_v49 = vmul.f32 %v206_v43, %v124_v45  ;;  %v120_v3 = vstv %s191_s16 }
  0x3d   :  { %v139_v4 = vstv %s196_s17 }
  0x3e   :  { %v143_v9 = vstv %s197_s18 }
  0x3f   :  { %v208_v50 = vpop.eup %207  ;;  %v146_v10 = vstv %s198_s19 }
  0x40   :  { %v109_v51 = vmul.f32 %v208_v50, %v108_v46  ;;  %v128_v52 = vmul.f32 %v208_v50, %v127_v47  ;;  %v150_v15 = vstv %s199_s20 }
  0x42   :  { %v110_v55 = vadd.f32 %v109_v51, %v106_v48  ;;  %v129_v56 = vadd.f32 %v128_v52, %v125_v49 }
  0x43   :  { %v210_v57 = vpop.eup %209 }
  0x44   :  { %v113_v58 = vmul.f32 %v210_v57, %v112_v53  ;;  %v132_v59 = vmul.f32 %v210_v57, %v131_v54 }
  0x46   :  { %v114_v62 = vadd.f32 %v113_v58, %v110_v55  ;;  %v133_v63 = vadd.f32 %v132_v59, %v129_v56 }
  0x47   :  { %v212_v0 = vpop.eup %211 }
  0x48   :  { %v117_v1 = vmul.f32 %v212_v0, %v116_v60  ;;  %v136_v2 = vmul.f32 %v212_v0, %v135_v61 }
  0x4a   :  { %v118_v5 = vadd.f32 %v117_v1, %v114_v62  ;;  %v137_v6 = vadd.f32 %v136_v2, %v133_v63 }
  0x4c   :  { %v121_v7 = vadd.f32 %v120_v3, %v118_v5  ;;  %v140_v8 = vadd.f32 %v139_v4, %v137_v6 }
  0x4e   :  { %213 = vtanh.f32 %v121_v7 }
  0x4f   :  { %215 = vtanh.f32 %v140_v8 }
  0x5b   :  { %v214_v11 = vpop.eup %213 }
  0x5c   :  { %v216_v12 = vpop.eup %215  ;;  %v144_v13 = vmul.f32 %v214_v11, %v143_v9 }
  0x5d   :  { %v147_v14 = vmul.f32 %v216_v12, %v146_v10 }
  0x5f   :  { %v148_v16 = vadd.f32 %v147_v14, %v144_v13 }
  0x61   :  { %v151_v17 = vadd.f32 %v150_v15, %v148_v16 }
  0x63   :  { %217 = vtanh.f32 %v151_v17 }
  0x70   :  { %v218_v18 = vpop.eup %217 }
  0x71   :  { %v153_v19 = vmul.f32 0.5, %v218_v18 }
  0x73   :  { %v154_v20 = vadd.f32 0.5, %v153_v19 }
  0x75   :  { %155 = vst [vmem:[#allocation7] sm:$0x1] %v154_v20 }
  0x76   :  { %262 = shalt.err (!%p259_p0)
}
  0x77   :  { %165 = dma.vmem_to_hbm [thread:$0]  %s163_s21, 16, %s314_s2, [#allocation4]  }
  0x78   :  { %275 = dma.done.wait [#allocation4], 16  }
  0x79   :  { %276 = vsyncadd [#allocation4], 4294967280 }
  0x7a   :  { %169 = vsyncpa [#allocation3], 1 }
  0x7b   :  { %170 = vsyncpa [#allocation4], 1 }
  0x7c   :  { %171 = vsyncpa [#allocation5], 1 }

</bundles_post_ra>
